<compile_context>
chip_gen: v7x
topology: tpu7x:2x2x1
jax: 0.10.0
libtpu: 0.0.40
codegen_flags: <defaults>
</compile_context>

<pallas_src>
import functools
import math

import jax
import jax.numpy as jnp
from jax import lax
from jax.experimental import pallas as pl
from jax.experimental.pallas import tpu as pltpu


SCALE_FACTOR = 30.0
MARGIN = 0.2
_EPS_NORM = 1e-12      # F.normalize eps
_EPS_CLAMP = 1e-07     # clamp eps in the PyTorch forward


def _round_up(x, m):
    return ((x + m - 1) // m) * m


def _choose_tile(total, desired, unit):
    """Tile size (multiple of `unit`, <= desired) dividing the unit-padded
    total, so no extra padding / no post-kernel slice copy is needed."""
    padded = _round_up(total, unit)
    desired = max(unit, min(_round_up(desired, unit), padded))
    for cand in range(desired, unit - 1, -unit):
        if padded % cand == 0:
            return cand, padded
    return desired, _round_up(padded, desired)   # unreachable (unit divides)


# ---------------------------------------------------------------------------
# Kernels (inputs are pre-normalized bf16; all epilogue math in f32)
# ---------------------------------------------------------------------------

def _arcface_labeled_kernel(feat_ref, wT_ref, labels_ref, out_ref, *,
                            scale, cos_m, sin_m):
    """One (TB, TC) output tile of the margin path."""
    cos = jnp.dot(feat_ref[...], wT_ref[...],
                  preferred_element_type=jnp.float32)              # (TB, TC)
    c = jnp.clip(cos, -1.0 + _EPS_CLAMP, 1.0 - _EPS_CLAMP)
    # |c| <= 1 - 1e-7  =>  1 - c^2 >= ~2e-7 in f32, no max(., 0) guard needed.
    sin_theta = jnp.sqrt(1.0 - c * c)
    target = c * cos_m - sin_theta * sin_m                         # cos(θ+m)

    tb, tc = out_ref.shape
    # Offset the (TB,1) labels by the C-tile start (cheaper than offsetting
    # the full (TB,TC) iota).  The C-tile axis is grid axis 0 in both layouts.
    col = lax.broadcasted_iota(jnp.int32, (tb, tc), 1)
    one_hot = col == (labels_ref[...] - pl.program_id(0) * tc)

    out_ref[...] = (jnp.where(one_hot, target, c) * scale).astype(out_ref.dtype)


def _arcface_unlabeled_kernel(feat_ref, wT_ref, out_ref, *, scale):
    """labels is None path: scaled cosine similarity only."""
    cos = jnp.dot(feat_ref[...], wT_ref[...],
                  preferred_element_type=jnp.float32)
    out_ref[...] = (cos * scale).astype(out_ref.dtype)


# ---------------------------------------------------------------------------
# Wrapper
# ---------------------------------------------------------------------------

def arcface_forward(features, weight, labels=None, *,
                    scale_factor=SCALE_FACTOR, margin=MARGIN,
                    block_b=256, block_c=1024,
                    max_resident_feature_bytes=16 << 20,
                    out_dtype=jnp.float32):
    """ArcFaceLayer.forward.

    features: (B, D) float, weight: (C, D) float, labels: optional (B,) int.
    Returns (B, C) `out_dtype` logits (default float32, matching PyTorch).
    """
    B, D = features.shape
    C, Dw = weight.shape
    assert D == Dw, "features / weight in_features mismatch"

    # ---- wrapper-side normalization (f32, matches F.normalize) -> bf16 ----
    f32 = features.astype(jnp.float32)
    w32 = weight.astype(jnp.float32)
    f_n = f32 / jnp.maximum(jnp.linalg.norm(f32, axis=1, keepdims=True), _EPS_NORM)
    w_n = w32 / jnp.maximum(jnp.linalg.norm(w32, axis=1, keepdims=True), _EPS_NORM)
    feat = f_n.astype(jnp.bfloat16)                # (B, D)  bf16, streamed
    wT = w_n.T.astype(jnp.bfloat16)                # (D, C)  bf16, single pass

    # ---- tiling --------------------------------------------------------
    tc, Cp = _choose_tile(C, block_c, 128)         # lane-dense output tiles
    if Cp != C:
        wT = jnp.pad(wT, ((0, 0), (0, Cp - C)))

    Bp8 = _round_up(B, 8)
    resident = (Bp8 * D * 2) <= max_resident_feature_bytes
    if resident:
        tb, Bp = Bp8, Bp8                          # full feature block resident
    else:
        tb, Bp = _choose_tile(B, block_b, 8)
    if Bp != B:
        feat = jnp.pad(feat, ((0, Bp - B), (0, 0)))

    out_shape = jax.ShapeDtypeStruct((Bp, Cp), out_dtype)
    out_bytes = jnp.dtype(out_dtype).itemsize

    if resident:
        # 1-D grid over C tiles; feature block index never changes -> one DMA.
        grid = (Cp // tc,)
        feat_spec = pl.BlockSpec((Bp, D), lambda j: (0, 0))
        wT_spec = pl.BlockSpec((D, tc), lambda j: (0, j))
        out_spec = pl.BlockSpec((Bp, tc), lambda j: (0, j))
        lab_spec = pl.BlockSpec((Bp, 1), lambda j: (0, 0))
        dims = ("parallel",)
        feat_passes = 1
    else:
        # C outer (weight tile fetched once per C tile), B inner.
        grid = (Cp // tc, Bp // tb)
        feat_spec = pl.BlockSpec((tb, D), lambda j, i: (i, 0))
        wT_spec = pl.BlockSpec((D, tc), lambda j, i: (0, j))
        out_spec = pl.BlockSpec((tb, tc), lambda j, i: (i, j))
        lab_spec = pl.BlockSpec((tb, 1), lambda j, i: (i, 0))
        dims = ("parallel", "arbitrary")
        feat_passes = Cp // tc

    # ---- VMEM budget (generation-aware) --------------------------------
    try:
        vmem_cap = int(pltpu.get_tpu_info().vmem_capacity_bytes)
    except Exception:
        vmem_cap = 64 << 20                        # v7x per-TC physical VMEM
    tile_bytes = (tb * D * 2                       # feature tile (bf16)
                  + D * tc * 2                     # weight tile (bf16)
                  + tb * 4                         # labels tile
                  + tb * tc * out_bytes)           # output tile
    # double-buffered tiles + headroom; never request the full physical VMEM.
    vmem_limit = int(min(max(2 * tile_bytes + (4 << 20), 32 << 20),
                         vmem_cap - (8 << 20)))

    cparams = pltpu.CompilerParams(
        dimension_semantics=dims,
        vmem_limit_bytes=vmem_limit,
    )
    cost = pl.CostEstimate(
        flops=2 * Bp * Cp * D,
        transcendentals=(Bp * Cp) if labels is not None else 0,
        bytes_accessed=(D * Cp * 2                       # weight: single pass
                        + feat_passes * Bp * D * 2       # feature stream
                        + (feat_passes * Bp * 4 if labels is not None else 0)
                        + Bp * Cp * out_bytes),          # logits writeback
    )

    # TODO(synk): with very small D the weight DMA can exceed per-step compute;
    # pipeline_mode=pl.Buffered(3) on wT_spec is the next knob if profiling
    # shows exposed DMA (verify against the VMEM budget first).

    if labels is None:
        kernel = functools.partial(_arcface_unlabeled_kernel,
                                   scale=float(scale_factor))
        out = pl.pallas_call(
            kernel,
            grid=grid,
            in_specs=[feat_spec, wT_spec],
            out_specs=out_spec,
            out_shape=out_shape,
            compiler_params=cparams,
            cost_estimate=cost,
        )(feat, wT)
    else:
        lab = labels.reshape(-1).astype(jnp.int32)
        if Bp != B:
            lab = jnp.pad(lab, (0, Bp - B))
        lab2d = lab.reshape(Bp, 1)
        kernel = functools.partial(
            _arcface_labeled_kernel,
            scale=float(scale_factor),
            cos_m=math.cos(float(margin)),
            sin_m=math.sin(float(margin)),
        )
        out = pl.pallas_call(
            kernel,
            grid=grid,
            in_specs=[feat_spec, wT_spec, lab_spec],
            out_specs=out_spec,
            out_shape=out_shape,
            compiler_params=cparams,
            cost_estimate=cost,
        )(feat, wT, lab2d)

    if Bp != B or Cp != C:
        out = out[:B, :C]
    return out


# ---------------------------------------------------------------------------
# References & demo
# ---------------------------------------------------------------------------

def _xavier_uniform(key, out_features, in_features):
    a = math.sqrt(6.0 / (in_features + out_features))
    return jax.random.uniform(key, (out_features, in_features),
                              dtype=jnp.float32, minval=-a, maxval=a)


def _reference_f32(features, weight, labels=None):
    """Faithful fp32 mirror of the PyTorch module."""
    f = features / jnp.maximum(
        jnp.linalg.norm(features, axis=1, keepdims=True), _EPS_NORM)
    w = weight / jnp.maximum(
        jnp.linalg.norm(weight, axis=1, keepdims=True), _EPS_NORM)
    cos_theta = f @ w.T
    if labels is None:
        return cos_theta * SCALE_FACTOR
    c = jnp.clip(cos_theta, -1.0 + _EPS_CLAMP, 1.0 - _EPS_CLAMP)
    theta = jnp.arccos(c)
    one_hot = jax.nn.one_hot(labels, weight.shape[0], dtype=c.dtype)
    return jnp.cos(theta + one_hot * MARGIN) * SCALE_FACTOR


def _reference_mirrored(features, weight, labels=None):
    """Reference with the kernel's numerics (f32 normalize -> bf16 MXU)."""
    f32 = features.astype(jnp.float32)
    w32 = weight.astype(jnp.float32)
    f_n = f32 / jnp.maximum(jnp.linalg.norm(f32, axis=1, keepdims=True), _EPS_NORM)
    w_n = w32 / jnp.maximum(jnp.linalg.norm(w32, axis=1, keepdims=True), _EPS_NORM)
    cos = jnp.dot(f_n.astype(jnp.bfloat16), w_n.T.astype(jnp.bfloat16),
                  preferred_element_type=jnp.float32)
    if labels is None:
        return cos * SCALE_FACTOR
    c = jnp.clip(cos, -1.0 + _EPS_CLAMP, 1.0 - _EPS_CLAMP)
    theta = jnp.arccos(c)
    one_hot = jax.nn.one_hot(labels, weight.shape[0], dtype=c.dtype)
    return jnp.cos(theta + one_hot * MARGIN) * SCALE_FACTOR


if __name__ == "__main__":
    B = 128           # batch
    IN_FEATURES = 256
    OUT_FEATURES = 512

    key = jax.random.PRNGKey(0)
    k_feat, k_w, k_lab = jax.random.split(key, 3)

    features = jax.random.normal(k_feat, (B, IN_FEATURES), dtype=jnp.float32)
    weight = _xavier_uniform(k_w, OUT_FEATURES, IN_FEATURES)
    labels = jax.random.randint(k_lab, (B,), 0, OUT_FEATURES, dtype=jnp.int32)

    # Resident-feature path: 1-D grid over 4 C tiles (block_c=128 to force a
    # real multi-tile grid at these small demo shapes).
    out_labeled = jax.block_until_ready(
        arcface_forward(features, weight, labels, block_c=128))
    out_unlabeled = jax.block_until_ready(
        arcface_forward(features, weight, None, block_c=128))
    # Tiled-B fallback path: 2-D grid (C outer, B inner), exercises the
    # per-C-tile label offset together with B tiling.
    out_labeled_tiled = jax.block_until_ready(
        arcface_forward(features, weight, labels, block_b=64, block_c=128,
                        max_resident_feature_bytes=0))

    assert out_labeled.shape == (B, OUT_FEATURES)
    assert out_unlabeled.shape == (B, OUT_FEATURES)
    assert out_labeled_tiled.shape == (B, OUT_FEATURES)

    # Tight check vs a reference with the same numerics (bf16 MXU operands).
    ref_l = _reference_mirrored(features, weight, labels)
    ref_u = _reference_mirrored(features, weight, None)
    assert jnp.allclose(out_labeled, ref_l, atol=2e-3, rtol=2e-3), \
        float(jnp.max(jnp.abs(out_labeled - ref_l)))
    assert jnp.allclose(out_unlabeled, ref_u, atol=2e-3, rtol=2e-3), \
        float(jnp.max(jnp.abs(out_unlabeled - ref_u)))
    assert jnp.allclose(out_labeled_tiled, ref_l, atol=2e-3, rtol=2e-3), \
        float(jnp.max(jnp.abs(out_labeled_tiled - ref_l)))

    # Semantic-fidelity check vs the faithful fp32 PyTorch math (bf16 operand
    # rounding bounds the scaled-logit error well under 0.25).
    ref_l32 = _reference_f32(features, weight, labels)
    ref_u32 = _reference_f32(features, weight, None)
    assert jnp.allclose(out_labeled, ref_l32, atol=0.25), \
        float(jnp.max(jnp.abs(out_labeled - ref_l32)))
    assert jnp.allclose(out_unlabeled, ref_u32, atol=0.25), \
        float(jnp.max(jnp.abs(out_unlabeled - ref_u32)))
    assert jnp.allclose(out_labeled_tiled, ref_l32, atol=0.25), \
        float(jnp.max(jnp.abs(out_labeled_tiled - ref_l32)))

    print("KERNEL_OK")
</pallas_src>

<mosaic_0001>
module attributes {stable_mosaic.version = 11 : i64} {
  func.func @_arcface_labeled_kernel(%arg0: i32, %arg1: memref<128x256xbf16, #tpu.memory_space<vmem>>, %arg2: memref<256x128xbf16, #tpu.memory_space<vmem>>, %arg3: memref<128x1xi32, #tpu.memory_space<vmem>>, %arg4: memref<128x128xf32, #tpu.memory_space<vmem>>) attributes {dimension_semantics = [#tpu.dimension_semantics<parallel>], iteration_bounds = array<i64: 4>, scalar_prefetch = 0 : i64, scratch_operands = 0 : i64, tpu.core_type = #tpu.core_type<tc>, window_params = [{pipeline_mode = #tpu.pipeline_mode<synchronous>, transform_indices = @transform_0, window_bounds = array<i64: 128, 256>}, {transform_indices = @transform_1, window_bounds = array<i64: 256, 128>}, {pipeline_mode = #tpu.pipeline_mode<synchronous>, transform_indices = @transform_2, window_bounds = array<i64: 128, 1>}, {transform_indices = @transform_3, window_bounds = array<i64: 128, 128>}]} {
    %c0 = arith.constant 0 : index
    %c0_0 = arith.constant 0 : index
    %0 = vector.load %arg1[%c0, %c0_0] : memref<128x256xbf16, #tpu.memory_space<vmem>>, vector<128x256xbf16>
    %c0_1 = arith.constant 0 : index
    %c0_2 = arith.constant 0 : index
    %1 = vector.load %arg2[%c0_1, %c0_2] : memref<256x128xbf16, #tpu.memory_space<vmem>>, vector<256x128xbf16>
    %cst = arith.constant dense<0.000000e+00> : vector<128x128xf32>
    %2 = tpu.matmul %0, %1, %cst {dimension_numbers = #tpu.dot_dimension_numbers<[1], [0], [0], [1], [0, 0, 1, 1], [], []>} : vector<128x256xbf16>, vector<256x128xbf16>, vector<128x128xf32> -> vector<128x128xf32>
    %cst_3 = arith.constant -0.99999988 : f32
    %cst_4 = arith.constant 0.99999988 : f32
    %3 = vector.broadcast %cst_3 : f32 to vector<128x128xf32>
    %4 = arith.maximumf %3, %2 : vector<128x128xf32>
    %5 = vector.broadcast %cst_4 : f32 to vector<128x128xf32>
    %6 = arith.minimumf %5, %4 : vector<128x128xf32>
    %7 = arith.mulf %6, %6 : vector<128x128xf32>
    %cst_5 = arith.constant 1.000000e+00 : f32
    %8 = vector.broadcast %cst_5 : f32 to vector<128x128xf32>
    %9 = arith.subf %8, %7 : vector<128x128xf32>
    %10 = math.sqrt %9 : vector<128x128xf32>
    %cst_6 = arith.constant 0.980066597 : f32
    %11 = vector.broadcast %cst_6 : f32 to vector<128x128xf32>
    %12 = arith.mulf %6, %11 : vector<128x128xf32>
    %cst_7 = arith.constant 0.198669329 : f32
    %13 = vector.broadcast %cst_7 : f32 to vector<128x128xf32>
    %14 = arith.mulf %10, %13 : vector<128x128xf32>
    %15 = arith.subf %12, %14 : vector<128x128xf32>
    %16 = tpu.iota {dimensions = array<i32: 1>} : vector<128x128xi32>
    %c0_8 = arith.constant 0 : index
    %c0_9 = arith.constant 0 : index
    %17 = vector.load %arg3[%c0_8, %c0_9] : memref<128x1xi32, #tpu.memory_space<vmem>>, vector<128x1xi32>
    %c128_i32 = arith.constant 128 : i32
    %18 = arith.muli %arg0, %c128_i32 : i32
    %19 = vector.broadcast %18 : i32 to vector<128x1xi32>
    %20 = arith.subi %17, %19 : vector<128x1xi32>
    %21 = vector.broadcast %20 : vector<128x1xi32> to vector<128x128xi32>
    %22 = arith.cmpi eq, %16, %21 : vector<128x128xi32>
    %23 = arith.select %22, %15, %6 : vector<128x128xi1>, vector<128x128xf32>
    %cst_10 = arith.constant 3.000000e+01 : f32
    %24 = vector.broadcast %cst_10 : f32 to vector<128x128xf32>
    %25 = arith.mulf %23, %24 : vector<128x128xf32>
    %c0_11 = arith.constant 0 : index
    %c0_12 = arith.constant 0 : index
    %26 = vector.load %arg4[%c0_11, %c0_12] : memref<128x128xf32, #tpu.memory_space<vmem>>, vector<128x128xf32>
    tpu.vector_store %arg4[%c0_11, %c0_12], %25 {strides = array<i32>} : memref<128x128xf32, #tpu.memory_space<vmem>>, vector<128x128xf32>,
    return
  }
  func.func @transform_0(%arg0: i32) -> (i32, i32) {
    %c0_i32 = arith.constant 0 : i32
    %c0_i32_0 = arith.constant 0 : i32
    %c0_i32_1 = arith.constant 0 : i32
    return %c0_i32, %c0_i32_0 : i32, i32
  }
  func.func @transform_1(%arg0: i32) -> (i32, i32) {
    %c0_i32 = arith.constant 0 : i32
    %c0_i32_0 = arith.constant 0 : i32
    return %c0_i32, %arg0 : i32, i32
  }
  func.func @transform_2(%arg0: i32) -> (i32, i32) {
    %c0_i32 = arith.constant 0 : i32
    %c0_i32_0 = arith.constant 0 : i32
    %c0_i32_1 = arith.constant 0 : i32
    return %c0_i32, %c0_i32_0 : i32, i32
  }
  func.func @transform_3(%arg0: i32) -> (i32, i32) {
    %c0_i32 = arith.constant 0 : i32
    %c0_i32_0 = arith.constant 0 : i32
    return %c0_i32, %arg0 : i32, i32
  }
}

</mosaic_0001>

<bundles_post_ra>
// kernel: tpu_custom_call.1
= control target key start
LH: loop header
LB: loop body
LE: loop exit
PB: predicated region body
PF: predicated region fallthrough
CT: control target
= control target key end

     0   :  { %8 = vsyncpa [#allocation3], 0  ;;  %s2042_s0 = inlined_call_operand.vmem [shape: bf16[128,256], index: 0, kind: input, shape index: {}]   ;;  %s2043_s1 = inlined_call_operand.hbm [shape: bf16[256,512], index: 1, kind: input, shape index: {}]   ;;  %s2044_s2 = inlined_call_operand.vmem [shape: s32[128,1], index: 2, kind: input, shape index: {}]   ;;  %s2045_s3 = inlined_call_operand.hbm [shape: f32[128,512], index: 3, kind: output, shape index: {}]  }
   0x1   :  { %10 = vsyncpa [#allocation3 + $0x1], 0 }
   0x2   :  { %11 = vsyncpa [#allocation4], 0 }
   0x3   :  { %13 = vsyncpa [#allocation4 + $0x1], 0  ;;  %s1363_s12 = smov 0   ;;  %s1365_s13 = smov 0  }
   0x4   :  { %s1367_s14 = smov 0   ;;  %s1369_s15 = smov 0  }
   0x5 LB: > { %s1384_s16 = sadd.s32 4294967295, %s1332_s15   ;;  %s968_s17 = sadd.s32 4294967294, %s1332_s15   ;;  %s1332_s15 = sphi %s1369_s15, %s2058_s15   ;;  %s1328_s14 = sphi %s1367_s14, %s2057_s14   ;;  %s1324_s13 = sphi %s1365_s13, %s2056_s13   ;;  %s1320_s12 = sphi %s1363_s12, %s2055_s12  }
   0x6   : > { %s1388_s18 = sadd.s32 1, %s1332_s15   ;;  %s47_s19 = sadd.s32 1, %s1328_s14 }
   0x7   : > { %s44_s20 = ssub.s32 %s1332_s15, %s1388_s18  ;;  %p54_p0 = scmp.ne.s32.totalorder %s1328_s14, %s1324_s13 }
   0x8   : > { %p45_p1 = scmp.eq.s32.totalorder %s44_s20, 0  ;;  %p55_p2 = scmp.eq.s32.totalorder %s1332_s15, 0 }
   0x9   : > { %p60_p3 = scmp.ne.s32.totalorder %s1324_s13, %s1320_s12  ;;  %p61_p4 = scmp.eq.s32.totalorder %s1384_s16, 0 }
   0xa   : > { %s1400_s21 = scalar_select %p45_p1, %s1328_s14, %s47_s19  }
   0xb   : > { %p1402_p5 = por %p55_p2, %p54_p0  ;;  %p1406_p6 = por %p61_p4, %p60_p3 }
   0xc   : > { %p105_p7 = scmp.eq.s32.totalorder %s1384_s16, 3  ;;  %p111_p8 = scmp.eq.s32.totalorder %s968_s17, 3 }
   0xd   : > { %p1121_p9 = scmp.lt.s32.totalorder %s1332_s15, 4  ;;  %s137_s26 = sand.u32 1, %s1328_s14  }
   0xe   : > { %p1412_p10 = por %p105_p7, %p54_p0  ;;  %p1416_p11 = por %p111_p8, %p60_p3 }
   0xf   : > { %s972_s27 = sshll.u32 %s1332_s15, 6  ;;  %s971_s28 = sshll.u32 %s137_s26, 7 }
  0x10   : > { %s2049_s24 = scalar_select %p1412_p10, 1, 0 }
  0x11   : > { %s2050_s25 = scalar_select %p1416_p11, 1, 0 }
  0x12   : > { %s1425_s4 = scalar_lea.hbm %s2043_s1, %s972_s27  ;;  %s141_s5 = scalar_lea.vmem [#allocation2], %s971_s28 }
  0x13   : > { %s147_s6 = sshll.u32 %s141_s5, 4  ;;  %p1429_p12 = pnand %p1121_p9, %p1402_p5  ;;  %s1433_s6 = int_to_ptr.vmem [resolvable:$true] %s147_s6 }
  0x14   : > { %s1436_s8 = scalar_lea.sflag [#allocation3], %s137_s26  ;;  %s1236_s9 = scalar_lea.hbm %s1425_s4, 2048 }
  0x15   : > { %p1237_p0 = scmp.ne.s32.totalorder %s1425_s4, %s1236_s9  ;;  %p1238_p1 = pneg %p1429_p12 }
  0x16   : > { %s1241_s17 = scalar_lea.hbm %s2043_s1, 8192  ;;  %p1242_p4 = scmp.lt.u32.totalorder %s1425_s4, %s2043_s1 }
  0x17   : > { %p1239_p2 = pnand %p1238_p1, %p1237_p0  ;;  %p1243_p5 = scmp.lt.u32.totalorder %s1241_s17, %s1236_s9 }
  0x18   : > { %p1245_p8 = scmp.lt.u32.totalorder %s1236_s9, %s1425_s4 }
  0x19   : > { %p1240_p3 = pneg %p1239_p2  ;;  %p1244_p7 = por %p1243_p5, %p1242_p4 }
  0x1b   : > { %p1246_p9 = por %p1245_p8, %p1244_p7 }
  0x1d   : > { %p1247_p13 = pnand %p1246_p9, %p1240_p3 }
  0x1f   : > { %1250 = shalt.err (!%p1247_p13)
}
  0x20   : > { %s1251_s22 = scalar_lea.vmem %s1433_s6, 2048  ;;  %s1334_s26 = smov [#allocation2]  }
  0x21   : > { %p1252_p0 = scmp.ne.s32.totalorder %s1433_s6, %s1251_s22  ;;  %s1256_s27 = sshll.u32 %s1334_s26, 4  ;;  %s1257_s27 = int_to_ptr.vmem [resolvable:$false] %s1256_s27 }
  0x22   : > { %s1258_s28 = scalar_lea.vmem %s1257_s27, 4096  ;;  %p1259_p10 = scmp.lt.s32.totalorder %s1433_s6, %s1257_s27 }
  0x23   : > { %p1254_p2 = pnand %p1252_p0, %p1238_p1  ;;  %p1260_p4 = scmp.lt.s32.totalorder %s1258_s28, %s1251_s22 }
  0x25   : > { %p1255_p11 = pneg %p1254_p2  ;;  %p1261_p5 = por %p1260_p4, %p1259_p10 }
  0x27   : > { %p1262_p7 = pnand %p1261_p5, %p1255_p11 }
  0x29   : > { %1265 = shalt.err (!%p1262_p7)
}
  0x2a   : > { %s1335_s29 = smov 256   ;;  %s1336_s30 = smov 64  }
  0x2b   : > { %s1337_s5 = smov 4   ;;  %p155_p13 = scmp.lt.s32.totalorder %s1332_s15, 5 }
  0x2c   : > { %1116 = dma.hbm_to_vmem [thread:$0]  (!%p1429_p12), %s1425_s4, 2048, %s1433_s6, %s1436_s8, %s1335_s29, %s1336_s30, %s1337_s5  }
  0x2d   : > { %p2052_p1 = scmp.ge.s32.totalorder %s1332_s15, 1 }
  0x2f   : > { %p156_p3 = pnand %p2052_p1, %p155_p13 }
  0x30   : > { %s1468_s9 = sand.u32 (!%p156_p3), 1, %s1324_s13  }
  0x31   : > { %159 = sbr.rel (%p156_p3) target bundleno = 396 (0x18c), region = 32  ;;  %s974_s10 = sshll.u32 (!%p156_p3), %s1468_s9, 7 }
  0x32   : > { %s162_s11 = scalar_lea.sflag (!%p156_p3), [#allocation3], %s1468_s9  ;;  %s1474_s17 = scalar_lea.vmem (!%p156_p3), [#allocation2], %s974_s10 }
  0x38   : > { %1311 = dma.done.wait (%p1406_p6), %s162_s11, 2048  }
  0x39   : > { %1313 = vsyncadd (%p1406_p6), %s162_s11, 4294965248  ;;  %v1338_v0 = vmov 0   ;;  %v1164_v1 = vld [vmem:[%s1474_s17 + $0x40] sm:$0xff]   ;;  %v1166_v3 = vld [vmem:[%s1474_s17 + $0x48] sm:$0xff]   ;;  %s1024_s8 = sshll.u32 %s1384_s16, 7  ;;  %s1817_s19 = scalar_lea.vmem [#allocation5], %s974_s10 }
  0x3a   : > { %1163 = vset.pattern.permute.xlu1 %v1338_v0  ;;  %1162 = vset.pattern.permute.xlu0 %v1338_v0  ;;  %v1165_v2 = vld [vmem:[%s1474_s17] sm:$0xff]   ;;  %v1167_v4 = vld [vmem:[%s1474_s17 + $0x8] sm:$0xff]   ;;  %v1168_v5 = vld [vmem:[%s1474_s17 + $0x50] sm:$0xff]   ;;  %v1504_v18 = vstv %s1024_s8  ;;  %s895_s10 = sshll.u32 %s1817_s19, 4  ;;  %s1991_s26 = scalar_lea.hbm %s2045_s3, %s1024_s8  ;;  %s1997_s10 = int_to_ptr.vmem [resolvable:$true] %s895_s10 }
  0x3b   : > { %1029 = vmatprep.subr.bf16.mxu0 %v1164_v1  ;;  %1093 = vmatprep.subr.bf16.mxu1 %v1164_v1  ;;  %v1169_v6 = vld [vmem:[%s1474_s17 + $0x10] sm:$0xff]   ;;  %v1170_v7 = vld [vmem:[%s1474_s17 + $0x58] sm:$0xff]   ;;  %v1172_v9 = vld [vmem:[%s1474_s17 + $0x60] sm:$0xff]   ;;  %s883_s16 = scalar_lea.sflag [#allocation4], %s1468_s9  ;;  %s1266_s27 = scalar_lea.vmem %s1997_s10, 2048 }
  0x3c   : > { %1030 = vmatpush3.bf16.msra.mxu0 %v1165_v2  ;;  %1101 = vmatpush3.bf16.msra.mxu1 %v1165_v2  ;;  %v1171_v8 = vld [vmem:[%s1474_s17 + $0x18] sm:$0xff]   ;;  %v1173_v10 = vld [vmem:[%s1474_s17 + $0x20] sm:$0xff]   ;;  %v1174_v11 = vld [vmem:[%s1474_s17 + $0x68] sm:$0xff]   ;;  %p1267_p6 = scmp.ne.s32.totalorder %s1997_s10, %s1266_s27  ;;  %p2053_p10 = scmp.ne.s32.totalorder %s2049_s24, 0 }
  0x3d   : > { %1031 = vmatprep.subr.bf16.mxu0 %v1166_v3  ;;  %1094 = vmatprep.subr.bf16.mxu1 %v1166_v3  ;;  %v1182_v12 = vld [vmem:[%s2042_s0 + $0x4] ss:$8 sps:$4 sm:$0xff]   ;;  %v1176_v15 = vld [vmem:[%s1474_s17 + $0x70] sm:$0xff]   ;;  %v1178_v17 = vld [vmem:[%s1474_s17 + $0x78] sm:$0xff]   ;;  %s1339_s8 = smov [#allocation5]  }
  0x3e   : > { %v1185_v13 = vld [vmem:[%s2042_s0 + $0x44] ss:$8 sps:$4 sm:$0xff]   ;;  %445 = vmatprep.mubr.bf16.mxu0 %v1182_v12  ;;  %v1177_v16 = vld [vmem:[%s1474_s17 + $0x30] sm:$0xff]   ;;  %v1179_v20 = vld [vmem:[%s1474_s17 + $0x38] sm:$0xff]   ;;  %p1268_p11 = pnand %p1267_p6, %p2053_p10  ;;  %s1270_s28 = sshll.u32 %s1339_s8, 4  ;;  %s1271_s28 = int_to_ptr.vmem [resolvable:$false] %s1270_s28 }
  0x3f   : > { %v1175_v14 = vld [vmem:[%s1474_s17 + $0x28] sm:$0xff]   ;;  %477 = vmatprep.mubr.bf16.mxu1 %v1185_v13  ;;  %v738_v19 = vld [vmem:[%s2044_s2 + $0x10] sm:$0xff]  ;;  %v736_v22 = vld [vmem:[%s2044_s2] sm:$0xff]  ;;  %s1272_s29 = scalar_lea.vmem %s1271_s28, 4096  ;;  %p1273_p8 = scmp.lt.s32.totalorder %s1997_s10, %s1271_s28 }
  0x40   : > { %1032 = vmatpush3.bf16.msra.mxu0 %v1167_v4  ;;  %1102 = vmatpush3.bf16.msra.mxu1 %v1167_v4  ;;  %v756_v21 = vsub.s32 %v738_v19, %v1504_v18  ;;  %v739_v23 = vld [vmem:[%s2044_s2 + $0x18] sm:$0xff]  ;;  %v754_v24 = vsub.s32 %v736_v22, %v1504_v18  ;;  %v737_v26 = vld [vmem:[%s2044_s2 + $0x8] sm:$0xff]  ;;  %v740_v34 = vld [vmem:[%s2044_s2 + $0x20] sm:$0xff]  ;;  %p1269_p12 = pneg %p1268_p11  ;;  %p1274_p9 = scmp.lt.s32.totalorder %s1272_s29, %s1266_s27 }
  0x41   : > { %1033 = vmatprep.subr.bf16.mxu0 %v1168_v5  ;;  %1095 = vmatprep.subr.bf16.mxu1 %v1168_v5  ;;  %v757_v25 = vsub.s32 %v739_v23, %v1504_v18  ;;  %v1180_v27 = vld [vmem:[%s2042_s0] ss:$8 sps:$4 sm:$0xff]   ;;  %v1186_v30 = vld [vmem:[%s2042_s0 + $0x14] ss:$8 sps:$4 sm:$0xff]   ;;  %v755_v32 = vsub.s32 %v737_v26, %v1504_v18  ;;  %v758_v36 = vsub.s32 %v740_v34, %v1504_v18  ;;  %v1190_v39 = vld [vmem:[%s2042_s0 + $0x10] ss:$8 sps:$4 sm:$0xff]  }
  0x42   : > { %777 = vperm.xlu1 %1163, %v756_v21   ;;  %v1183_v28 = vld [vmem:[%s2042_s0 + $0x40] ss:$8 sps:$4 sm:$0xff]   ;;  %771 = vperm.xlu0 %1162, %v754_v24   ;;  %v1188_v31 = vld [vmem:[%s2042_s0 + $0x54] ss:$8 sps:$4 sm:$0xff]   ;;  %v1191_v40 = vld [vmem:[%s2042_s0 + $0x50] ss:$8 sps:$4 sm:$0xff]   ;;  %p1275_p0 = por %p1274_p9, %p1273_p8 }
  0x43   : > { %v741_v29 = vld [vmem:[%s2044_s2 + $0x28] sm:$0xff]  ;;  %v743_v35 = vld [vmem:[%s2044_s2 + $0x38] sm:$0xff]  ;;  %v742_v38 = vld [vmem:[%s2044_s2 + $0x30] sm:$0xff] }
  0x44   : > { %1034 = vmatpush3.bf16.msra.mxu0 %v1169_v6  ;;  %1103 = vmatpush3.bf16.msra.mxu1 %v1169_v6  ;;  %v759_v33 = vsub.s32 %v741_v29, %v1504_v18  ;;  %v761_v37 = vsub.s32 %v743_v35, %v1504_v18  ;;  %v745_v41 = vld [vmem:[%s2044_s2 + $0x48] sm:$0xff]  ;;  %v760_v44 = vsub.s32 %v742_v38, %v1504_v18  ;;  %v744_v46 = vld [vmem:[%s2044_s2 + $0x40] sm:$0xff]  ;;  %v747_v47 = vld [vmem:[%s2044_s2 + $0x58] sm:$0xff]  ;;  %p1276_p2 = pnand %p1275_p0, %p1269_p12 }
  0x45   : > { %1035 = vmatprep.subr.bf16.mxu0 %v1170_v7  ;;  %1096 = vmatprep.subr.bf16.mxu1 %v1170_v7  ;;  %v1192_v42 = vld [vmem:[%s2042_s0 + $0x24] ss:$8 sps:$4 sm:$0xff]   ;;  %v763_v45 = vsub.s32 %v745_v41, %v1504_v18  ;;  %v762_v48 = vsub.s32 %v744_v46, %v1504_v18  ;;  %v765_v49 = vsub.s32 %v747_v47, %v1504_v18  ;;  %v746_v50 = vld [vmem:[%s2044_s2 + $0x50] sm:$0xff]  ;;  %v1196_v51 = vld [vmem:[%s2042_s0 + $0x20] ss:$8 sps:$4 sm:$0xff]  }
  0x46   : > { %780 = vperm.xlu1 %1163, %v757_v25   ;;  %774 = vperm.xlu0 %1162, %v755_v32   ;;  %v1194_v43 = vld [vmem:[%s2042_s0 + $0x64] ss:$8 sps:$4 sm:$0xff]   ;;  %v1197_v52 = vld [vmem:[%s2042_s0 + $0x60] ss:$8 sps:$4 sm:$0xff]   ;;  %v1198_v54 = vld [vmem:[%s2042_s0 + $0x34] ss:$8 sps:$4 sm:$0xff]   ;;  %v764_v56 = vsub.s32 %v746_v50, %v1504_v18 }
  0x47   : > { %v749_v53 = vld [vmem:[%s2044_s2 + $0x68] sm:$0xff]  ;;  %v1200_v55 = vld [vmem:[%s2042_s0 + $0x74] ss:$8 sps:$4 sm:$0xff]   ;;  %v748_v58 = vld [vmem:[%s2044_s2 + $0x60] sm:$0xff] }
  0x48   : > { %1036 = vmatpush3.bf16.msra.mxu0 %v1171_v8  ;;  %1104 = vmatpush3.bf16.msra.mxu1 %v1171_v8  ;;  %v767_v57 = vsub.s32 %v749_v53, %v1504_v18  ;;  %v751_v59 = vld [vmem:[%s2044_s2 + $0x78] sm:$0xff]  ;;  %v766_v60 = vsub.s32 %v748_v58, %v1504_v18  ;;  %v750_v62 = vld [vmem:[%s2044_s2 + $0x70] sm:$0xff] }
  0x49   : > { %1037 = vmatprep.subr.bf16.mxu0 %v1172_v9  ;;  %1097 = vmatprep.subr.bf16.mxu1 %v1172_v9  ;;  %v769_v61 = vsub.s32 %v751_v59, %v1504_v18  ;;  %v1202_v63 = vld [vmem:[%s2042_s0 + $0x30] ss:$8 sps:$4 sm:$0xff]   ;;  %v768_v1 = vsub.s32 %v750_v62, %v1504_v18 }
  0x4a   : > { %786 = vperm.xlu1 %1163, %v759_v33   ;;  %783 = vperm.xlu0 %1162, %v758_v36   ;;  %v1203_v0 = vld [vmem:[%s2042_s0 + $0x70] ss:$8 sps:$4 sm:$0xff]  }
  0x4c   : > { %1038 = vmatpush3.bf16.msra.mxu0 %v1173_v10  ;;  %1105 = vmatpush3.bf16.msra.mxu1 %v1173_v10 }
  0x4d   : > { %1039 = vmatprep.subr.bf16.mxu0 %v1174_v11  ;;  %1098 = vmatprep.subr.bf16.mxu1 %v1174_v11 }
  0x4e   : > { %792 = vperm.xlu1 %1163, %v761_v37   ;;  %789 = vperm.xlu0 %1162, %v760_v44  }
  0x50   : > { %1040 = vmatpush3.bf16.msra.mxu0 %v1175_v14  ;;  %1106 = vmatpush3.bf16.msra.mxu1 %v1175_v14 }
  0x51   : > { %1041 = vmatprep.subr.bf16.mxu0 %v1176_v15  ;;  %1099 = vmatprep.subr.bf16.mxu1 %v1176_v15 }
  0x52   : > { %798 = vperm.xlu1 %1163, %v763_v45   ;;  %795 = vperm.xlu0 %1162, %v762_v48  }
  0x54   : > { %1042 = vmatpush3.bf16.msra.mxu0 %v1177_v16  ;;  %1107 = vmatpush3.bf16.msra.mxu1 %v1177_v16 }
  0x55   : > { %1043 = vmatprep.subr.bf16.mxu0 %v1178_v17  ;;  %1100 = vmatprep.subr.bf16.mxu1 %v1178_v17 }
  0x56   : > { %804 = vperm.xlu1 %1163, %v765_v49   ;;  %801 = vperm.xlu0 %1162, %v764_v56  }
  0x58   : > { %1044 = vmatpush3.bf16.msra.mxu0 %v1179_v20  ;;  %1108 = vmatpush3.bf16.msra.mxu1 %v1179_v20 }
  0x5a   : > { %810 = vperm.xlu1 %1163, %v767_v57   ;;  %807 = vperm.xlu0 %1162, %v766_v60  }
  0x5b   : > { %446 = vmatmul.mubr.bf16.vlgmr.msra.gmra.mrb[0].mxu0 %v1180_v27  ;;  %478 = vmatmul.mubr.bf16.vlgmr.msra.gmra.mrb[0].mxu1 %v1183_v28 }
  0x5c   : > { %453 = vmatprep.mubr.bf16.mxu0 %v1186_v30  ;;  %485 = vmatprep.mubr.bf16.mxu1 %v1188_v31  ;;  %v734_v30 = vlaneseq }
  0x5e   : > { %816 = vperm.xlu1 %1163, %v769_v61   ;;  %813 = vperm.xlu0 %1162, %v768_v1   ;;  %v1651_v45 = vand.u32 127, %v734_v30 }
  0x63   : > { %454 = vmatmul.mubr.bf16.gmra.mrb[4].mxu0 %v1190_v39  ;;  %486 = vmatmul.mubr.bf16.gmra.mrb[4].mxu1 %v1191_v40 }
  0x64   : > { %461 = vmatprep.mubr.bf16.mxu0 %v1192_v42  ;;  %493 = vmatprep.mubr.bf16.mxu1 %v1194_v43 }
  0x6b   : > { %462 = vmatmul.mubr.bf16.gmra.mrb[8].mxu0 %v1196_v51  ;;  %494 = vmatmul.mubr.bf16.gmra.mrb[8].mxu1 %v1197_v52 }
  0x6c   : > { %469 = vmatprep.mubr.bf16.mxu0 %v1198_v54  ;;  %501 = vmatprep.mubr.bf16.mxu1 %v1200_v55 }
  0x73   : > { %470 = vmatmul.mubr.bf16.gmra.mrb[12].mxu0 %v1202_v63  ;;  %502 = vmatmul.mubr.bf16.gmra.mrb[12].mxu1 %v1203_v0 }
  0xc1   : > { %v1613_v2 = vpop.permute.xlu1 %777  ;;  %v1615_v3 = vpop.permute.xlu0 %771 }
  0xc2   : > { %vm818_vm5 = vcmp.eq.s32.totalorder %v1651_v45, %v1615_v3 }
  0xc5   : > { %v1617_v4 = vpop.permute.xlu1 %780  ;;  %v1619_v5 = vpop.permute.xlu0 %774 }
  0xc6   : > { %vm819_vm9 = vcmp.eq.s32.totalorder %v1651_v45, %v1619_v5 }
  0xc9   : > { %v1633_v24 = vpop.permute.xlu1 %786  ;;  %v1635_v25 = vpop.permute.xlu0 %783 }
  0xcd   : > { %v1661_v48 = vpop.permute.xlu0 %789  ;;  %v1675_v54 = vpop.permute.xlu1 %792 }
 0x12e   : > { %v1045_v6 = vpop.f32.mrb[0].mxu0  ;;  %v1069_v7 = vpop.f32.mrb[0].mxu1 }
 0x12f   : > { %v1046_v8 = vpop.f32.mrb[1].mxu0  ;;  %v1070_v9 = vpop.f32.mrb[1].mxu1 }
 0x130   : > { %v1047_v10 = vadd.f32 %v1046_v8, %v1045_v6  ;;  %v1071_v11 = vadd.f32 %v1070_v9, %v1069_v7  ;;  %v1048_v12 = vpop.f32.mrb[2].mxu0  ;;  %v1072_v13 = vpop.f32.mrb[2].mxu1 }
 0x131   : > { %v1049_v14 = vpop.f32.mrb[3].mxu0  ;;  %v1073_v15 = vpop.f32.mrb[3].mxu1 }
 0x132   : > { %v1621_v16 = vclamps-f32 %v1047_v10, 0.9999999  ;;  %v1623_v17 = vclamps-f32 %v1071_v11, 0.9999999  ;;  %v1050_v18 = vadd.f32 %v1049_v14, %v1048_v12  ;;  %v1074_v19 = vadd.f32 %v1073_v15, %v1072_v13 }
 0x134   : > { %v542_v20 = vmul.f32 %v1621_v16, %v1621_v16  ;;  %v550_v21 = vmul.f32 %v1623_v17, %v1623_v17  ;;  %v1629_v22 = vclamps-f32 %v1050_v18, 0.9999999  ;;  %v1631_v23 = vclamps-f32 %v1074_v19, 0.9999999  ;;  %v1715_v19 = vpop.permute.xlu0 %795 }
 0x135   : > { %v1654_v46 = vmul.f32 0.9800666, %v1621_v16  ;;  %v1657_v47 = vmul.f32 0.9800666, %v1623_v17  ;;  %vm826_vm8 = vcmp.eq.s32.totalorder %v1651_v45, %v1715_v19 }
 0x136   : > { %v1637_v26 = vsub.f32 1.0, %v542_v20  ;;  %v1639_v27 = vsub.f32 1.0, %v550_v21  ;;  %v1051_v28 = vpop.f32.mrb[4].mxu0  ;;  %v1075_v29 = vpop.f32.mrb[4].mxu1  ;;  %v543_v31 = vmul.f32 %v1629_v22, %v1629_v22  ;;  %v551_v32 = vmul.f32 %v1631_v23, %v1631_v23 }
 0x137   : > { %v1052_v33 = vpop.f32.mrb[5].mxu0  ;;  %v1076_v34 = vpop.f32.mrb[5].mxu1  ;;  %v1670_v52 = vmul.f32 0.9800666, %v1629_v22  ;;  %v1673_v53 = vmul.f32 0.9800666, %v1631_v23 }
 0x138   : > { %1204 = vrsqrt.f32 %v1637_v26  ;;  %v1054_v35 = vpop.f32.mrb[6].mxu0  ;;  %v1078_v36 = vpop.f32.mrb[6].mxu1  ;;  %v1647_v37 = vsub.f32 1.0, %v543_v31  ;;  %v1649_v38 = vsub.f32 1.0, %v551_v32  ;;  %v1053_v39 = vadd.f32 %v1052_v33, %v1051_v28 }
 0x139   : > { %1206 = vrsqrt.f32 %v1639_v27  ;;  %v1055_v40 = vpop.f32.mrb[7].mxu0  ;;  %v1079_v41 = vpop.f32.mrb[7].mxu1  ;;  %v1077_v42 = vadd.f32 %v1076_v34, %v1075_v29  ;;  %vm576_vm0 = vcmp.eq.f32.partialorder %v1637_v26, inf  ;;  %vm578_vm1 = vcmp.eq.f32.partialorder %v1637_v26, 0.0 }
 0x13a   : > { %v1056_v43 = vadd.f32 %v1055_v40, %v1054_v35  ;;  %v1080_v44 = vadd.f32 %v1079_v41, %v1078_v36  ;;  %1208 = vrsqrt.f32 %v1647_v37  ;;  %v1663_v49 = vclamps-f32 %v1053_v39, 0.9999999  ;;  %v1739_v35 = vpop.permute.xlu1 %798 }
 0x13b   : > { %1210 = vrsqrt.f32 %v1649_v38  ;;  %v1665_v50 = vclamps-f32 %v1077_v42, 0.9999999  ;;  %v579_v60 = vand.u32 2147483648, %v1637_v26  ;;  %vm632_vm2 = vcmp.eq.f32.partialorder %v1639_v27, inf }
 0x13c   : > { %v1667_v51 = vclamps-f32 %v1056_v43, 0.9999999  ;;  %v1677_v55 = vclamps-f32 %v1080_v44, 0.9999999  ;;  %v544_v56 = vmul.f32 %v1663_v49, %v1663_v49  ;;  %vm583_vm3 = vcmp.eq.f32.partialorder %v1647_v37, inf }
 0x13d   : > { %v552_v57 = vmul.f32 %v1665_v50, %v1665_v50  ;;  %vm585_vm4 = vcmp.eq.f32.partialorder %v1647_v37, 0.0  ;;  %v586_v18 = vand.u32 2147483648, %v1647_v37  ;;  %vm639_vm6 = vcmp.eq.f32.partialorder %v1649_v38, inf }
 0x13e   : > { %v1057_v58 = vpop.f32.mrb[8].mxu0  ;;  %v1081_v59 = vpop.f32.mrb[8].mxu1  ;;  %v545_v61 = vmul.f32 %v1667_v51, %v1667_v51  ;;  %v553_v62 = vmul.f32 %v1677_v55, %v1677_v55  ;;  %v1693_v1 = vsub.f32 1.0, %v544_v56  ;;  %vm641_vm7 = vcmp.eq.f32.partialorder %v1649_v38, 0.0 }
 0x13f   : > { %v1058_v63 = vpop.f32.mrb[9].mxu0  ;;  %v1082_v0 = vpop.f32.mrb[9].mxu1  ;;  %v1695_v6 = vsub.f32 1.0, %v552_v57  ;;  %v1719_v28 = vmul.f32 0.9800666, %v1663_v49  ;;  %v642_v29 = vand.u32 2147483648, %v1649_v38  ;;  %vm827_vm12 = vcmp.eq.s32.totalorder %v1651_v45, %v1739_v35 }
 0x140   : > { %v1697_v7 = vpop.f32.mrb[10].mxu0  ;;  %v1699_v8 = vpop.f32.mrb[10].mxu1  ;;  %v1701_v9 = vsub.f32 1.0, %v545_v61  ;;  %v1703_v10 = vsub.f32 1.0, %v553_v62  ;;  %v1059_v11 = vadd.f32 %v1058_v63, %v1057_v58  ;;  %v1083_v12 = vadd.f32 %v1082_v0, %v1081_v59 }
 0x141   : > { %v1705_v13 = vpop.f32.mrb[11].mxu0  ;;  %v1707_v14 = vpop.f32.mrb[11].mxu1  ;;  %1212 = vrsqrt.f32 %v1693_v1  ;;  %v1726_v30 = vmul.f32 0.9800666, %v1665_v50  ;;  %v1730_v31 = vmul.f32 0.9800666, %v1667_v51 }
 0x142   : > { %v1205_v15 = vpop.eup %1204  ;;  %1214 = vrsqrt.f32 %v1695_v6  ;;  %vm634_vm10 = vcmp.eq.f32.partialorder %v1639_v27, 0.0  ;;  %v635_v36 = vand.u32 2147483648, %v1639_v27  ;;  %vm590_vm11 = vcmp.eq.f32.partialorder %v1693_v1, inf }
 0x143   : > { %v1207_v20 = vpop.eup %1206  ;;  %v575_v21 = vmul.f32 %v1205_v15, %v1637_v26  ;;  %1216 = vrsqrt.f32 %v1701_v9  ;;  %v593_v42 = vand.u32 2147483648, %v1693_v1  ;;  %vm592_vm13 = vcmp.eq.f32.partialorder %v1693_v1, 0.0 }
 0x144   : > { %v631_v32 = vmul.f32 %v1207_v20, %v1639_v27  ;;  %v1209_v33 = vpop.eup %1208  ;;  %1218 = vrsqrt.f32 %v1703_v10  ;;  %vm597_vm14 = vcmp.eq.f32.partialorder %v1701_v9, inf  ;;  %vm646_vm15 = vcmp.eq.f32.partialorder %v1695_v6, inf }
 0x145   : > { %v577_v34 = vsel %vm576_vm0, %v1637_v26, %v575_v21  ;;  %v1211_v39 = vpop.eup %1210  ;;  %v582_v41 = vmul.f32 %v1209_v33, %v1647_v37  ;;  %v600_v26 = vand.u32 2147483648, %v1701_v9  ;;  %v1769_v63 = vclamps-f32 %v1059_v11, 0.9999999 }
 0x146   : > { %v580_v40 = vsel %vm578_vm1, %v579_v60, %v577_v34  ;;  %v633_v43 = vsel %vm632_vm2, %v1639_v27, %v631_v32  ;;  %v1753_v44 = vpop.f32.mrb[12].mxu0  ;;  %v1755_v56 = vpop.f32.mrb[12].mxu1  ;;  %v638_v58 = vmul.f32 %v1211_v39, %v1649_v38  ;;  %vm599_vm0 = vcmp.eq.f32.partialorder %v1701_v9, 0.0 }
 0x147   : > { %v702_v57 = vmul.f32 0.19866933, %v580_v40  ;;  %v636_v59 = vsel %vm634_vm10, %v635_v36, %v633_v43  ;;  %v1760_v60 = vpop.f32.mrb[13].mxu0  ;;  %v1762_v61 = vpop.f32.mrb[13].mxu1  ;;  %v584_v27 = vsel %vm583_vm3, %v1647_v37, %v582_v41  ;;  %vm653_vm1 = vcmp.eq.f32.partialorder %v1703_v10, inf }
 0x148   : > { %v710_v62 = vmul.f32 0.19866933, %v636_v59  ;;  %v1771_v0 = vpop.f32.mrb[14].mxu0  ;;  %v587_v20 = vsel %vm585_vm4, %v586_v18, %v584_v27  ;;  %v640_v21 = vsel %vm639_vm6, %v1649_v38, %v638_v58  ;;  %v1781_v32 = vclamps-f32 %v1083_v12, 0.9999999  ;;  %v1783_v33 = vpop.f32.mrb[14].mxu1 }
 0x149   : > { %v718_v15 = vsub.f32 %v1654_v46, %v702_v57  ;;  %v1785_v11 = vpop.f32.mrb[15].mxu0  ;;  %v703_v34 = vmul.f32 0.19866933, %v587_v20  ;;  %v643_v46 = vsel %vm641_vm7, %v642_v29, %v640_v21  ;;  %v546_v18 = vmul.f32 %v1769_v63, %v1769_v63  ;;  %v1792_v36 = vpop.f32.mrb[15].mxu1 }
 0x14a   : > { %v726_v37 = vsub.f32 %v1657_v47, %v710_v62  ;;  %v711_v39 = vmul.f32 0.19866933, %v643_v46  ;;  %vm648_vm2 = vcmp.eq.f32.partialorder %v1695_v6, 0.0  ;;  %v554_v38 = vmul.f32 %v1781_v32, %v1781_v32 }
 0x14b   : > { %v834_v12 = vsel %vm818_vm5, %v718_v15, %v1621_v16  ;;  %v1213_v29 = vpop.eup %1212  ;;  %vm820_vm3 = vcmp.eq.s32.totalorder %v1651_v45, %v1613_v2  ;;  %v719_v40 = vsub.f32 %v1670_v52, %v703_v34  ;;  %v1808_v16 = vsub.f32 1.0, %v546_v18 }
 0x14c   : > { %v850_v47 = vmul.f32 30.0, %v834_v12  ;;  %v842_v3 = vsel %vm826_vm8, %v726_v37, %v1623_v17  ;;  %v1215_v41 = vpop.eup %1214  ;;  %v589_v43 = vmul.f32 %v1213_v29, %v1693_v1  ;;  %v727_v57 = vsub.f32 %v1673_v53, %v711_v39 }
 0x14d   : > { %v858_v58 = vmul.f32 30.0, %v842_v3  ;;  %v649_v59 = vand.u32 2147483648, %v1695_v6  ;;  %v1217_v27 = vpop.eup %1216  ;;  %vm821_vm4 = vcmp.eq.s32.totalorder %v1651_v45, %v1617_v4  ;;  %v835_v17 = vsel %vm819_vm9, %v719_v40, %v1629_v22  ;;  %v802_v40 = vpop.permute.xlu0 %801 }
 0x14e   : > { %866 = vst [vmem:[%s1817_s19] sm:$0xff] %v850_v47  ;;  %v645_v52 = vmul.f32 %v1215_v41, %v1695_v6  ;;  %1220 = vrsqrt.f32 %v1808_v16  ;;  %v1826_v53 = vsub.f32 1.0, %v554_v38  ;;  %v1219_v19 = vpop.eup %1218  ;;  %v851_v62 = vmul.f32 30.0, %v835_v17 }
 0x14f   : > { %v591_v15 = vsel %vm590_vm11, %v1693_v1, %v589_v43  ;;  %v596_v20 = vmul.f32 %v1217_v27, %v1701_v9  ;;  %v843_v5 = vsel %vm827_vm12, %v727_v57, %v1631_v23  ;;  %874 = vst [vmem:[%s1817_s19 + $0x40] sm:$0xff] %v858_v58  ;;  %v652_v34 = vmul.f32 %v1219_v19, %v1703_v10  ;;  %v805_v43 = vpop.permute.xlu1 %804 }
 0x150   : > { %v594_v22 = vsel %vm592_vm13, %v593_v42, %v591_v15  ;;  %v859_v21 = vmul.f32 30.0, %v843_v5  ;;  %v647_v46 = vsel %vm646_vm15, %v1695_v6, %v645_v52  ;;  %867 = vst [vmem:[%s1817_s19 + $0x8] sm:$0xff] %v851_v62  ;;  %v656_v35 = vand.u32 2147483648, %v1703_v10 }
 0x151   : > { %v704_v37 = vmul.f32 0.19866933, %v594_v22  ;;  %v598_v18 = vsel %vm597_vm14, %v1701_v9, %v596_v20  ;;  %v650_v23 = vsel %vm648_vm2, %v649_v59, %v647_v46  ;;  %v654_v42 = vsel %vm653_vm1, %v1703_v10, %v652_v34 }
 0x152   : > { %v601_v1 = vsel %vm599_vm0, %v600_v26, %v598_v18  ;;  %875 = vst [vmem:[%s1817_s19 + $0x48] sm:$0xff] %v859_v21  ;;  %vm655_vm5 = vcmp.eq.f32.partialorder %v1703_v10, 0.0  ;;  %v712_v12 = vmul.f32 0.19866933, %v650_v23  ;;  %1222 = vrsqrt.f32 %v1826_v53 }
 0x153   : > { %v720_v39 = vsub.f32 %v1719_v28, %v704_v37  ;;  %v705_v38 = vmul.f32 0.19866933, %v601_v1  ;;  %v657_v29 = vsel %vm655_vm5, %v656_v35, %v654_v42  ;;  %v697_v6 = vmul.f32 0.9800666, %v1677_v55 }
 0x154   : > { %v713_v47 = vmul.f32 0.19866933, %v657_v29  ;;  %v728_v9 = vsub.f32 %v1726_v30, %v712_v12  ;;  %v1062_v26 = vadd.f32 %v1705_v13, %v1697_v7  ;;  %vm828_vm6 = vcmp.eq.s32.totalorder %v1651_v45, %v802_v40  ;;  %v808_v12 = vpop.permute.xlu0 %807 }
 0x155   : > { %v836_v10 = vsel %vm820_vm3, %v720_v39, %v1663_v49  ;;  %v721_v28 = vsub.f32 %v1730_v31, %v705_v38  ;;  %v1086_v3 = vadd.f32 %v1707_v14, %v1699_v8  ;;  %vm829_vm7 = vcmp.eq.s32.totalorder %v1651_v45, %v805_v43 }
 0x156   : > { %v852_v41 = vmul.f32 30.0, %v836_v10  ;;  %v729_v30 = vsub.f32 %v697_v6, %v713_v47  ;;  %v844_v57 = vsel %vm828_vm6, %v728_v9, %v1665_v50  ;;  %v1874_v58 = vclamps-f32 %v1062_v26, 0.9999999 }
 0x157   : > { %v837_v2 = vsel %vm821_vm4, %v721_v28, %v1667_v51  ;;  %v860_v49 = vmul.f32 30.0, %v844_v57  ;;  %v1881_v7 = vclamps-f32 %v1086_v3, 0.9999999  ;;  %vm604_vm8 = vcmp.eq.f32.partialorder %v1808_v16, inf }
 0x158   : > { %v1221_v8 = vpop.eup %1220  ;;  %868 = vst [vmem:[%s1817_s19 + $0x10] sm:$0xff] %v852_v41  ;;  %v853_v13 = vmul.f32 30.0, %v837_v2  ;;  %v845_v14 = vsel %vm829_vm7, %v729_v30, %v1677_v55  ;;  %v547_v50 = vmul.f32 %v1874_v58, %v1874_v58  ;;  %vm606_vm9 = vcmp.eq.f32.partialorder %v1808_v16, 0.0 }
 0x159   : > { %v861_v31 = vmul.f32 30.0, %v845_v14  ;;  %876 = vst [vmem:[%s1817_s19 + $0x50] sm:$0xff] %v860_v49  ;;  %v603_v4 = vmul.f32 %v1221_v8, %v1808_v16  ;;  %v555_v51 = vmul.f32 %v1881_v7, %v1881_v7  ;;  %v607_v59 = vand.u32 2147483648, %v1808_v16  ;;  %v814_v8 = vpop.permute.xlu0 %813  ;;  %v811_v14 = vpop.permute.xlu1 %810 }
 0x15a   : > { %869 = vst [vmem:[%s1817_s19 + $0x18] sm:$0xff] %v853_v13  ;;  %v563_v27 = vsub.f32 1.0, %v547_v50  ;;  %v1065_v55 = vadd.f32 %v1760_v60, %v1753_v44  ;;  %v1089_v17 = vadd.f32 %v1762_v61, %v1755_v56  ;;  %v1068_v62 = vadd.f32 %v1785_v11, %v1771_v0 }
 0x15b   : > { %877 = vst [vmem:[%s1817_s19 + $0x58] sm:$0xff] %v861_v31  ;;  %v605_v52 = vsel %vm604_vm8, %v1808_v16, %v603_v4  ;;  %v571_v19 = vsub.f32 1.0, %v555_v51  ;;  %v1092_v15 = vadd.f32 %v1792_v36, %v1783_v33  ;;  %v690_v22 = vmul.f32 0.9800666, %v1769_v63 }
 0x15c   : > { %v608_v20 = vsel %vm606_vm9, %v607_v59, %v605_v52  ;;  %1224 = vrsqrt.f32 %v563_v27  ;;  %v1223_v5 = vpop.eup %1222  ;;  %vm660_vm10 = vcmp.eq.f32.partialorder %v1826_v53, inf  ;;  %v663_v56 = vand.u32 2147483648, %v1826_v53 }
 0x15d   : > { %v706_v21 = vmul.f32 0.19866933, %v608_v20  ;;  %1226 = vrsqrt.f32 %v571_v19  ;;  %v659_v44 = vmul.f32 %v1223_v5, %v1826_v53  ;;  %v1909_v60 = vclamps-f32 %v1065_v55, 0.9999999 }
 0x15e   : > { %v1911_v0 = vclamps-f32 %v1089_v17, 0.9999999  ;;  %v1913_v11 = vclamps-f32 %v1068_v62, 0.9999999  ;;  %v1915_v33 = vclamps-f32 %v1092_v15, 0.9999999  ;;  %vm822_vm11 = vcmp.eq.s32.totalorder %v1651_v45, %v1635_v25 }
 0x15f   : > { %v722_v61 = vsub.f32 %v690_v22, %v706_v21  ;;  %v661_v36 = vsel %vm660_vm10, %v1826_v53, %v659_v44  ;;  %vm662_vm12 = vcmp.eq.f32.partialorder %v1826_v53, 0.0  ;;  %v548_v16 = vmul.f32 %v1909_v60, %v1909_v60 }
 0x160   : > { %v698_v46 = vmul.f32 0.9800666, %v1781_v32  ;;  %v664_v37 = vsel %vm662_vm12, %v663_v56, %v661_v36  ;;  %v556_v18 = vmul.f32 %v1911_v0, %v1911_v0  ;;  %v549_v25 = vmul.f32 %v1913_v11, %v1913_v11 }
 0x161   : > { %v838_v34 = vsel %vm822_vm11, %v722_v61, %v1769_v63  ;;  %v714_v23 = vmul.f32 0.19866933, %v664_v37  ;;  %v564_v1 = vsub.f32 1.0, %v548_v16  ;;  %v557_v53 = vmul.f32 %v1915_v33, %v1915_v33 }
 0x162   : > { %v854_v35 = vmul.f32 30.0, %v838_v34  ;;  %v1929_v42 = vsub.f32 1.0, %v556_v18  ;;  %vm830_vm13 = vcmp.eq.s32.totalorder %v1651_v45, %v808_v12  ;;  %v1937_v29 = vsub.f32 1.0, %v549_v25  ;;  %v817_v12 = vpop.permute.xlu1 %816 }
 0x163   : > { %v730_v63 = vsub.f32 %v698_v46, %v714_v23  ;;  %1228 = vrsqrt.f32 %v564_v1  ;;  %v1939_v6 = vsub.f32 1.0, %v557_v53  ;;  %vm611_vm14 = vcmp.eq.f32.partialorder %v563_v27, inf }
 0x164   : > { %870 = vst [vmem:[%s1817_s19 + $0x20] sm:$0xff] %v854_v35  ;;  %1230 = vrsqrt.f32 %v1929_v42  ;;  %vm613_vm15 = vcmp.eq.f32.partialorder %v563_v27, 0.0  ;;  %v614_v26 = vand.u32 2147483648, %v563_v27  ;;  %vm667_vm0 = vcmp.eq.f32.partialorder %v571_v19, inf }
 0x165   : > { %v846_v38 = vsel %vm830_vm13, %v730_v63, %v1781_v32  ;;  %1232 = vrsqrt.f32 %v1937_v29  ;;  %v670_v3 = vand.u32 2147483648, %v571_v19  ;;  %vm669_vm1 = vcmp.eq.f32.partialorder %v571_v19, 0.0 }
 0x166   : > { %v1225_v39 = vpop.eup %1224  ;;  %v862_v9 = vmul.f32 30.0, %v846_v38  ;;  %1234 = vrsqrt.f32 %v1939_v6  ;;  %v691_v43 = vmul.f32 0.9800666, %v1874_v58  ;;  %v699_v2 = vmul.f32 0.9800666, %v1881_v7 }
 0x167   : > { %v1227_v47 = vpop.eup %1226  ;;  %v610_v40 = vmul.f32 %v1225_v39, %v563_v27  ;;  %vm823_vm2 = vcmp.eq.s32.totalorder %v1651_v45, %v1633_v24  ;;  %vm824_vm3 = vcmp.eq.s32.totalorder %v1651_v45, %v1661_v48  ;;  %vm831_vm4 = vcmp.eq.s32.totalorder %v1651_v45, %v811_v14 }
 0x168   : > { %v666_v10 = vmul.f32 %v1227_v47, %v571_v19  ;;  %878 = vst [vmem:[%s1817_s19 + $0x60] sm:$0xff] %v862_v9  ;;  %v692_v4 = vmul.f32 0.9800666, %v1909_v60  ;;  %vm832_vm5 = vcmp.eq.s32.totalorder %v1651_v45, %v814_v8  ;;  %vm618_vm6 = vcmp.eq.f32.partialorder %v564_v1, inf }
 0x169   : > { %v612_v28 = vsel %vm611_vm14, %v563_v27, %v610_v40  ;;  %vm620_vm7 = vcmp.eq.f32.partialorder %v564_v1, 0.0  ;;  %v621_v17 = vand.u32 2147483648, %v564_v1  ;;  %vm674_vm8 = vcmp.eq.f32.partialorder %v1929_v42, inf }
 0x16a   : > { %v615_v32 = vsel %vm613_vm15, %v614_v26, %v612_v28  ;;  %v668_v41 = vsel %vm667_vm0, %v571_v19, %v666_v10  ;;  %v677_v15 = vand.u32 2147483648, %v1929_v42  ;;  %vm676_vm9 = vcmp.eq.f32.partialorder %v1929_v42, 0.0 }
 0x16b   : > { %v707_v30 = vmul.f32 0.19866933, %v615_v32  ;;  %v671_v57 = vsel %vm669_vm1, %v670_v3, %v668_v41  ;;  %v700_v22 = vmul.f32 0.9800666, %v1911_v0  ;;  %vm625_vm10 = vcmp.eq.f32.partialorder %v1937_v29, inf }
 0x16c   : > { %v715_v49 = vmul.f32 0.19866933, %v671_v57  ;;  %vm627_vm11 = vcmp.eq.f32.partialorder %v1937_v29, 0.0  ;;  %v628_v36 = vand.u32 2147483648, %v1937_v29  ;;  %vm681_vm12 = vcmp.eq.f32.partialorder %v1939_v6, inf }
 0x16d   : > { %v723_v13 = vsub.f32 %v691_v43, %v707_v30  ;;  %v1229_v50 = vpop.eup %1228  ;;  %v684_v37 = vand.u32 2147483648, %v1939_v6  ;;  %vm683_vm13 = vcmp.eq.f32.partialorder %v1939_v6, 0.0  ;;  %v693_v25 = vmul.f32 0.9800666, %v1913_v11 }
 0x16e   : > { %v731_v31 = vsub.f32 %v699_v2, %v715_v49  ;;  %v1231_v51 = vpop.eup %1230  ;;  %v617_v27 = vmul.f32 %v1229_v50, %v564_v1  ;;  %v701_v38 = vmul.f32 0.9800666, %v1915_v33  ;;  %vm825_vm14 = vcmp.eq.s32.totalorder %v1651_v45, %v1675_v54 }
 0x16f   : > { %v839_v59 = vsel %vm823_vm2, %v723_v13, %v1874_v58  ;;  %v673_v52 = vmul.f32 %v1231_v51, %v1929_v42  ;;  %v1233_v20 = vpop.eup %1232  ;;  %vm833_vm15 = vcmp.eq.s32.totalorder %v1651_v45, %v817_v12 }
 0x170   : > { %v855_v24 = vmul.f32 30.0, %v839_v59  ;;  %v847_v55 = vsel %vm831_vm4, %v731_v31, %v1881_v7  ;;  %v619_v62 = vsel %vm618_vm6, %v564_v1, %v617_v27  ;;  %v1235_v21 = vpop.eup %1234  ;;  %v624_v56 = vmul.f32 %v1233_v20, %v1937_v29 }
 0x171   : > { %v863_v19 = vmul.f32 30.0, %v847_v55  ;;  %v622_v58 = vsel %vm620_vm7, %v621_v17, %v619_v62  ;;  %v675_v5 = vsel %vm674_vm8, %v1929_v42, %v673_v52  ;;  %v680_v16 = vmul.f32 %v1235_v21, %v1939_v6 }
 0x172   : > { %871 = vst [vmem:[%s1817_s19 + $0x28] sm:$0xff] %v855_v24  ;;  %v708_v7 = vmul.f32 0.19866933, %v622_v58  ;;  %v678_v44 = vsel %vm676_vm9, %v677_v15, %v675_v5  ;;  %v626_v46 = vsel %vm625_vm10, %v1937_v29, %v624_v56 }
 0x173   : > { %879 = vst [vmem:[%s1817_s19 + $0x68] sm:$0xff] %v863_v19  ;;  %v716_v61 = vmul.f32 0.19866933, %v678_v44  ;;  %v629_v35 = vsel %vm627_vm11, %v628_v36, %v626_v46  ;;  %v682_v23 = vsel %vm681_vm12, %v1939_v6, %v680_v16 }
 0x174   : > { %v724_v34 = vsub.f32 %v692_v4, %v708_v7  ;;  %v709_v42 = vmul.f32 0.19866933, %v629_v35  ;;  %v685_v53 = vsel %vm683_vm13, %v684_v37, %v682_v23 }
 0x175   : > { %v732_v18 = vsub.f32 %v700_v22, %v716_v61  ;;  %v717_v29 = vmul.f32 0.19866933, %v685_v53 }
 0x176   : > { %v840_v1 = vsel %vm824_vm3, %v724_v34, %v1909_v60  ;;  %v725_v48 = vsub.f32 %v693_v25, %v709_v42 }
 0x177   : > { %v856_v63 = vmul.f32 30.0, %v840_v1  ;;  %v848_v39 = vsel %vm832_vm5, %v732_v18, %v1911_v0  ;;  %v733_v60 = vsub.f32 %v701_v38, %v717_v29 }
 0x178   : > { %v864_v6 = vmul.f32 30.0, %v848_v39  ;;  %v841_v0 = vsel %vm825_vm14, %v725_v48, %v1913_v11 }
 0x179   : > { %872 = vst [vmem:[%s1817_s19 + $0x30] sm:$0xff] %v856_v63  ;;  %v857_v47 = vmul.f32 30.0, %v841_v0  ;;  %v849_v40 = vsel %vm833_vm15, %v733_v60, %v1915_v33 }
 0x17a   : > { %880 = vst [vmem:[%s1817_s19 + $0x70] sm:$0xff] %v864_v6  ;;  %v865_v54 = vmul.f32 30.0, %v849_v40 }
 0x17b   : > { %873 = vst [vmem:[%s1817_s19 + $0x38] sm:$0xff] %v857_v47 }
 0x17c   : > { %881 = vst [vmem:[%s1817_s19 + $0x78] sm:$0xff] %v865_v54 }
 0x17d   : > { %1279 = shalt.err (!%p1276_p2)
}
 0x17e   : > { %s1280_s30 = scalar_lea.hbm %s1991_s26, 2048  ;;  %s1284_s17 = scalar_lea.hbm %s2045_s3, 8192 }
 0x17f   : > { %p1281_p4 = scmp.ne.s32.totalorder %s1991_s26, %s1280_s30  ;;  %p1285_p13 = scmp.lt.u32.totalorder %s1991_s26, %s2045_s3 }
 0x180   : > { %p1286_p1 = scmp.lt.u32.totalorder %s1284_s17, %s1280_s30  ;;  %p1288_p6 = scmp.lt.u32.totalorder %s1280_s30, %s1991_s26 }
 0x181   : > { %p1282_p5 = pnand %p1281_p4, %p2053_p10 }
 0x182   : > { %p1287_p3 = por %p1286_p1, %p1285_p13 }
 0x183   : > { %p1283_p7 = pneg %p1282_p5 }
 0x184   : > { %p1289_p11 = por %p1288_p6, %p1287_p3 }
 0x186   : > { %p1290_p12 = pnand %p1289_p11, %p1283_p7 }
 0x188   : > { %1293 = shalt.err (!%p1290_p12)
}
 0x189   : > { %s1340_s6 = smov 128   ;;  %s1341_s7 = smov 512  }
 0x18a   : > { %s1342_s19 = smov 8  }
 0x18b   : > { %1111 = dma.vmem_to_hbm [thread:$0]  (%p2053_p10), %s1997_s10, 2048, %s1991_s26, %s883_s16, %s1340_s6, %s1341_s7, %s1342_s19  }
 0x18c PF: > { %p1122_p8 = scmp.ge.s32.totalorder %s1332_s15, 2  ;;  %s910_s20 = sand.u32 1, %s1320_s12  }
 0x18d   : > { %p2054_p9 = scmp.ne.s32.totalorder %s2050_s25, 0  ;;  %s911_s22 = scalar_lea.sflag [#allocation4], %s910_s20 }
 0x18f   : > { %p1118_p0 = pnand %p1122_p8, %p2054_p9 }
 0x191   : > { %1315 = dma.done.wait (!%p1118_p0), %s911_s22, 2048  }
 0x192   : > { %1317 = vsyncadd (!%p1118_p0), %s911_s22, 4294965248  ;;  %p16_p2 = scmp.ge.s32.totalorder %s1388_s18, 6   ;;  %s2055_s12 = smov %s1324_s13 }
 0x193   : > { %s2056_s13 = smov %s1328_s14  ;;  %s2057_s14 = smov %s1400_s21 }
 0x194   : > { %s2058_s15 = smov %s1388_s18  ;;  %18 = sbr.rel (!%p16_p2) target bundleno = 5 (0x5), region = 77 }
 0x19b   :  { %916 = vsyncpa [#allocation3], 1 }
 0x19c   :  { %918 = vsyncpa [#allocation3 + $0x1], 1 }
 0x19d   :  { %919 = vsyncpa [#allocation4], 1 }
 0x19e   :  { %921 = vsyncpa [#allocation4 + $0x1], 1 }

</bundles_post_ra>
